<compile_context>
chip_gen: v7x
topology: tpu7x:2x2x1
jax: 0.10.0
libtpu: 0.0.40
codegen_flags: <defaults>
</compile_context>

<pallas_src>
import jax
import jax.numpy as jnp
from jax.experimental import pallas as pl
from jax.experimental.pallas import tpu as pltpu


def _round_up(x, m):
    return (x + m - 1) // m * m


# --------------------------- one-time operand folding (exact) ----------------------------

def _fold_block(w_hwio, bn_scale, bn_bias, B, H, W):
    """Fold conv(3x3, pad=1, no bias) + BN(eval) + avg_pool(2x2) of one block into:
         wd_cat   (W*Cin, 3*Wp*Cout): per-dy fold of dx taps / Cin / BN scale / w-pool
         mask     (B*H, 2)          : edge masks for the +-1 row shift (dy=0 / dy=2)
         ppool    (B*Hp, B*H)       : 0.5-weighted 2x1 h-pool, block-diagonal over batch
         bias_row (1, Wp*Cout)      : BN bias, added after the pool (exact)
       Built with pure broadcasting (entries are 0 / 0.5*weight), so the preparation
       itself introduces no matmul rounding."""
    Cin, Cout = int(w_hwio.shape[2]), int(w_hwio.shape[3])
    Hp, Wp = H // 2, W // 2
    ws = (w_hwio * bn_scale[None, None, None, :]).astype(jnp.float32)      # BN scale folded in

    w_in = jnp.arange(W)
    wp_i = jnp.arange(Wp)
    wd_list = []
    for dy in range(3):
        m = jnp.zeros((W, Cin, Wp, Cout), jnp.float32)
        for dx in range(3):
            w_out = w_in - (dx - 1)                  # conv output column fed by input col w_in
            valid = (w_out >= 0) & (w_out <= W - 1)
            a_dx = jnp.where(valid[:, None],
                             (w_out[:, None] // 2) == wp_i[None, :],
                             False).astype(jnp.float32) * 0.5               # (W, Wp)
            m = m + a_dx[:, None, :, None] * ws[dy, dx][None, :, None, :]
        wd_list.append(m.reshape(W * Cin, Wp * Cout))
    wd_cat = jnp.concatenate(wd_list, axis=1)                               # (W*Cin, 3*Wp*Cout)

    # Row-shift edge masks (per image): col 0 masks h == 0 (dy=0, roll +1),
    # col 1 masks h == H-1 (dy=2, roll -1).  Also kills cross-batch wraparound.
    h = jnp.arange(B * H) % H
    mask = jnp.stack([(h != 0), (h != H - 1)], axis=1).astype(jnp.float32)  # (B*H, 2)

    hp_i = jnp.arange(Hp)
    p = ((jnp.arange(H)[None, :] // 2) == hp_i[:, None]).astype(jnp.float32) * 0.5   # (Hp, H)
    ppool = jnp.kron(jnp.eye(B, dtype=jnp.float32), p)                               # (B*Hp, B*H)

    bias_row = jnp.tile(bn_bias.astype(jnp.float32), (Wp,))[None, :]                 # (1, Wp*Cout)
    return wd_cat, mask, ppool, bias_row


def _prepare_operands(params, B, C0, H0, W0):
    """Fold all parameters once and pack every weight-side operand into ONE
    (rows, 128)-aligned f32 buffer.  Returns (static python meta, packed array)."""
    arrays, offsets = [], []
    off = 0

    def add(a):
        nonlocal off
        o = off
        arrays.append(a)
        offsets.append(o)
        off += _round_up(int(a.shape[0]), 8)
        return o, int(a.shape[0]), int(a.shape[1])

    blocks_meta = []
    H, W, Cin = H0, W0, C0
    for (w_hwio, scale, bias) in params["blocks"]:
        Cout = int(w_hwio.shape[3])
        Hp, Wp = H // 2, W // 2
        wd_cat, mask, ppool, bias_row = _fold_block(w_hwio, scale, bias, B, H, W)
        wd_off, wd_rows, _ = add(wd_cat)
        m_off, _, _ = add(mask)
        pp_off, pp_rows, _ = add(ppool)
        b_off, _, _ = add(bias_row)
        blocks_meta.append(dict(BH=B * H, N=Wp * Cout,
                                wd_off=wd_off, wd_rows=wd_rows,
                                mask_off=m_off,
                                pp_off=pp_off, pp_rows=pp_rows,
                                bias_off=b_off))
        H, W, Cin = Hp, Wp, Cout

    Hf, Wf, Cf = H, W, Cin
    cond_dim = int(params["w1d"].shape[0])
    # torch: x.transpose(-1,-2).flatten(1,2) => Conv1d feature k = c*Wf + w; our cols are w*Cf + c.
    whead = jnp.transpose(params["w1d"].reshape(cond_dim, Cf, Wf), (2, 1, 0)
                          ).reshape(Wf * Cf, cond_dim).astype(jnp.float32)
    bhead = params["b1d"].astype(jnp.float32)[None, :]                               # (1, cond_dim)
    mh = jnp.kron(jnp.eye(B, dtype=jnp.float32),
                  jnp.full((1, Hf), 1.0 / Hf, jnp.float32))                          # (B, B*Hf)
    wh_off, wh_rows, _ = add(whead)
    bh_off, _, _ = add(bhead)
    mh_off, _, _ = add(mh)
    head_meta = dict(wh_off=wh_off, wh_rows=wh_rows, bh_off=bh_off, mh_off=mh_off,
                     B=B, BHf=B * Hf, cond=cond_dim)

    max_cols = max(int(a.shape[1]) for a in arrays)
    lanes = max(128, _round_up(max_cols, 128))
    rows = _round_up(off, 8)
    packed = jnp.zeros((rows, lanes), jnp.float32)
    for o, a in zip(offsets, arrays):
        packed = packed.at[o:o + int(a.shape[0]), 0:int(a.shape[1])].set(a)

    meta = dict(blocks=blocks_meta, head=head_meta, rows=rows, lanes=lanes,
                a_rows=B * H0, a_cols=W0 * C0, cond=cond_dim, batch=B)
    return meta, packed


# ---------------------------------- fused Pallas kernel -----------------------------------

def _build_kernel(meta):
    blocks, head = meta["blocks"], meta["head"]

    def kernel(a_ref, w_ref, o_ref):
        cur = a_ref[...]                                                  # (B*H0, W0*C0), f32
        for blk in blocks:
            bh, n = blk["BH"], blk["N"]
            wd = w_ref[pl.ds(blk["wd_off"], blk["wd_rows"]), pl.ds(0, 3 * n)]
            # One MXU dot: dx taps + Cin contraction + BN scale + 2x1 w-pool, all 3 dy rows.
            t = jnp.dot(cur, wd, preferred_element_type=jnp.float32)      # (bh, 3n)
            t0 = t[:, 0:n]
            t1 = t[:, n:2 * n]
            t2 = t[:, 2 * n:3 * n]
            # +-1 conv row shift on the sublane axis (XLU roll) + precomputed edge
            # masks (VPU) — replaces the previous three left matmuls.
            m = w_ref[pl.ds(blk["mask_off"], bh), pl.ds(0, 2)]
            s0 = m[:, 0:1] * pltpu.roll(t0, shift=1, axis=0)
            s2 = m[:, 1:2] * pltpu.roll(t2, shift=bh - 1, axis=0)
            z = t1 + s0 + s2                                              # conv rows, w-pooled
            pp = w_ref[pl.ds(blk["pp_off"], blk["pp_rows"]), pl.ds(0, bh)]
            bias = w_ref[pl.ds(blk["bias_off"], 1), pl.ds(0, n)]
            # 2x1 h-pool (block-diagonal over batch) + BN bias (exact after pooling).
            cur = jnp.dot(pp, z, preferred_element_type=jnp.float32) + bias

        wh = w_ref[pl.ds(head["wh_off"], head["wh_rows"]), pl.ds(0, head["cond"])]
        bhd = w_ref[pl.ds(head["bh_off"], 1), pl.ds(0, head["cond"])]
        mh = w_ref[pl.ds(head["mh_off"], head["B"]), pl.ds(0, head["BHf"])]
        # 1x1 Conv1d head + tanh + per-batch mean over the H positions (mean as a tiny dot).
        y = jnp.tanh(jnp.dot(cur, wh, preferred_element_type=jnp.float32) + bhd)
        o_ref[...] = jnp.dot(mh, y, preferred_element_type=jnp.float32).astype(o_ref.dtype)

    return kernel


# ------------------------------------- public builder -------------------------------------

def build_query_forward(params, *, batch, in_channels, input_size):
    """Fold parameters once (hoisted prep) and return a jitted forward:
         forward(x: (B, C, H, W)) -> (B, cond_dim, 1)
       The per-call path is only the x relayout + one pallas_call."""
    B, C0, H0, W0 = batch, in_channels, input_size, input_size
    meta, packed = _prepare_operands(params, B, C0, H0, W0)
    kernel = _build_kernel(meta)

    a_rows, a_cols = meta["a_rows"], meta["a_cols"]
    rows, lanes = meta["rows"], meta["lanes"]
    cond_dim = meta["cond"]

    fused = pl.pallas_call(
        kernel,
        out_shape=jax.ShapeDtypeStruct((B, cond_dim), jnp.float32),
        grid=(1,),
        in_specs=[pl.BlockSpec((a_rows, a_cols), lambda i: (0, 0)),
                  pl.BlockSpec((rows, lanes), lambda i: (0, 0))],
        out_specs=pl.BlockSpec((B, cond_dim), lambda i: (0, 0)),
        compiler_params=pltpu.CompilerParams(dimension_semantics=("arbitrary",)),
    )

    @jax.jit
    def forward(x):
        # NCHW -> A[b*H + h, w*C + c]; fused into the same executable as the pallas_call,
        # so a call is a single dispatch.  `packed` is a baked-in (hoisted) constant.
        a0 = jnp.transpose(x, (0, 2, 3, 1)).reshape(a_rows, a_cols).astype(jnp.float32)
        out = fused(a0, packed)
        return out[:, :, None]                                            # (B, cond_dim, 1)

    return forward


# ----------------------------- parameters & pure-JAX reference -----------------------------

def init_params(key, num_blocks, in_channels, input_size, cond_dim):
    """Random parameters matching the PyTorch module (BatchNorm folded for eval mode)."""
    params = {"blocks": []}
    cin, cout, size, eps = in_channels, 2, input_size, 1e-5
    for _ in range(num_blocks):
        key, k1, k2, k3, k4, k5 = jax.random.split(key, 6)
        w = jax.random.normal(k1, (3, 3, cin, cout), jnp.float32) * 0.2        # HWIO conv weight
        gamma = jax.random.uniform(k2, (cout,), jnp.float32, 0.5, 1.5)
        beta = jax.random.normal(k3, (cout,), jnp.float32) * 0.1
        rmean = jax.random.normal(k4, (cout,), jnp.float32) * 0.1
        rvar = jax.random.uniform(k5, (cout,), jnp.float32, 0.5, 1.5)
        scale = gamma / jnp.sqrt(rvar + eps)                                   # folded BN (eval)
        bias = beta - rmean * scale
        params["blocks"].append((w, scale, bias))
        cin, cout, size = cout, cout * 2, size // 2
    key, k1, k2 = jax.random.split(key, 3)
    K = cin * size                                                             # Conv1d in_channels
    params["w1d"] = jax.random.normal(k1, (cond_dim, K), jnp.float32) * 0.1    # (out, in), kernel=1
    params["b1d"] = jax.random.normal(k2, (cond_dim,), jnp.float32) * 0.1
    return params


def reference_forward(x_nchw, params):
    """Pure-JAX/XLA reference mirroring the PyTorch forward (BN in eval mode)."""
    x = x_nchw
    for (w_hwio, scale, bias) in params["blocks"]:
        w_oihw = jnp.transpose(w_hwio, (3, 2, 0, 1))
        x = jax.lax.conv_general_dilated(
            x, w_oihw, window_strides=(1, 1), padding=((1, 1), (1, 1)),
            dimension_numbers=("NCHW", "OIHW", "NCHW"))
        x = x * scale[None, :, None, None] + bias[None, :, None, None]
        B, C, H, W = x.shape
        x = x.reshape(B, C, H // 2, 2, W // 2, 2).mean(axis=(3, 5))
    B, C, H, W = x.shape
    z = jnp.transpose(x, (0, 1, 3, 2)).reshape(B, C * W, H)            # (B, K, H), k = c*W + w
    y = jnp.einsum("ok,bkh->bho", params["w1d"], z) + params["b1d"][None, None, :]
    y = jnp.tanh(y).mean(axis=1)                                       # mean over the H positions
    return y[:, :, None]                                               # (B, cond_dim, 1)


# ----------------------------------------- main --------------------------------------------

if __name__ == "__main__":
    config = dict(num_blocks=2, in_channels=4, input_size=16, cond_dim=32)
    key = jax.random.PRNGKey(0)
    kp, kx = jax.random.split(key)
    params = init_params(kp, **config)
    x = jax.random.normal(
        kx, (2, config["in_channels"], config["input_size"], config["input_size"]),
        jnp.float32)

    forward = build_query_forward(params, batch=2,
                                  in_channels=config["in_channels"],
                                  input_size=config["input_size"])
    out = jax.block_until_ready(forward(x))
    ref = jax.block_until_ready(reference_forward(x, params))

    assert out.shape == (2, config["cond_dim"], 1), out.shape
    max_err = float(jnp.max(jnp.abs(out - ref)))
    assert jnp.allclose(out, ref, atol=2e-4, rtol=2e-4), max_err
    print("KERNEL_OK")
</pallas_src>

<mosaic_0001>
module attributes {stable_mosaic.version = 11 : i64} {
  func.func @kernel(%arg0: i32, %arg1: memref<32x64xf32, #tpu.memory_space<vmem>>, %arg2: memref<200x128xf32, #tpu.memory_space<vmem>>, %arg3: memref<2x32xf32, #tpu.memory_space<vmem>>) attributes {dimension_semantics = [#tpu.dimension_semantics<arbitrary>], iteration_bounds = array<i64: 1>, scalar_prefetch = 0 : i64, scratch_operands = 0 : i64, tpu.core_type = #tpu.core_type<tc>, window_params = [{pipeline_mode = #tpu.pipeline_mode<synchronous>, transform_indices = @transform_0, window_bounds = array<i64: 32, 64>}, {pipeline_mode = #tpu.pipeline_mode<synchronous>, transform_indices = @transform_1, window_bounds = array<i64: 200, 128>}, {pipeline_mode = #tpu.pipeline_mode<synchronous>, transform_indices = @transform_2, window_bounds = array<i64: 2, 32>}]} {
    %c0 = arith.constant 0 : index
    %c0_0 = arith.constant 0 : index
    %0 = vector.load %arg1[%c0, %c0_0] : memref<32x64xf32, #tpu.memory_space<vmem>>, vector<32x64xf32>
    %c0_1 = arith.constant 0 : index
    %c0_2 = arith.constant 0 : index
    %1 = vector.load %arg2[%c0_1, %c0_2] : memref<200x128xf32, #tpu.memory_space<vmem>>, vector<64x48xf32>
    %cst = arith.constant dense<0.000000e+00> : vector<32x48xf32>
    %2 = tpu.matmul %0, %1, %cst {dimension_numbers = #tpu.dot_dimension_numbers<[1], [0], [0], [1], [0, 0, 1, 1], [], []>} : vector<32x64xf32>, vector<64x48xf32>, vector<32x48xf32> -> vector<32x48xf32>
    %3 = vector.extract_strided_slice %2 {offsets = [0, 0], sizes = [32, 16], strides = [1, 1]} : vector<32x48xf32> to vector<32x16xf32>
    %4 = vector.extract_strided_slice %2 {offsets = [0, 16], sizes = [32, 16], strides = [1, 1]} : vector<32x48xf32> to vector<32x16xf32>
    %5 = vector.extract_strided_slice %2 {offsets = [0, 32], sizes = [32, 16], strides = [1, 1]} : vector<32x48xf32> to vector<32x16xf32>
    %c64 = arith.constant 64 : index
    %c0_3 = arith.constant 0 : index
    %6 = vector.load %arg2[%c64, %c0_3] : memref<200x128xf32, #tpu.memory_space<vmem>>, vector<32x2xf32>
    %7 = vector.extract_strided_slice %6 {offsets = [0, 0], sizes = [32, 1], strides = [1, 1]} : vector<32x2xf32> to vector<32x1xf32>
    %c1_i32 = arith.constant 1 : i32
    %8 = tpu.dynamic_rotate %3 by %c1_i32 dim 0 : vector<32x16xf32>, i32 -> vector<32x16xf32>
    %9 = vector.broadcast %7 : vector<32x1xf32> to vector<32x16xf32>
    %10 = arith.mulf %9, %8 : vector<32x16xf32>
    %11 = vector.extract_strided_slice %6 {offsets = [0, 1], sizes = [32, 1], strides = [1, 1]} : vector<32x2xf32> to vector<32x1xf32>
    %c31_i32 = arith.constant 31 : i32
    %12 = tpu.dynamic_rotate %5 by %c31_i32 dim 0 : vector<32x16xf32>, i32 -> vector<32x16xf32>
    %13 = vector.broadcast %11 : vector<32x1xf32> to vector<32x16xf32>
    %14 = arith.mulf %13, %12 : vector<32x16xf32>
    %15 = arith.addf %4, %10 : vector<32x16xf32>
    %16 = arith.addf %15, %14 : vector<32x16xf32>
    %c96 = arith.constant 96 : index
    %c0_4 = arith.constant 0 : index
    %17 = vector.load %arg2[%c96, %c0_4] : memref<200x128xf32, #tpu.memory_space<vmem>>, vector<16x32xf32>
    %c112 = arith.constant 112 : index
    %c0_5 = arith.constant 0 : index
    %18 = vector.load %arg2[%c112, %c0_5] : memref<200x128xf32, #tpu.memory_space<vmem>>, vector<1x16xf32>
    %cst_6 = arith.constant dense<0.000000e+00> : vector<16x16xf32>
    %19 = tpu.matmul %17, %16, %cst_6 {dimension_numbers = #tpu.dot_dimension_numbers<[1], [0], [0], [1], [0, 0, 1, 1], [], []>} : vector<16x32xf32>, vector<32x16xf32>, vector<16x16xf32> -> vector<16x16xf32>
    %20 = vector.broadcast %18 : vector<1x16xf32> to vector<16x16xf32>
    %21 = arith.addf %19, %20 : vector<16x16xf32>
    %c120 = arith.constant 120 : index
    %c0_7 = arith.constant 0 : index
    %22 = vector.load %arg2[%c120, %c0_7] : memref<200x128xf32, #tpu.memory_space<vmem>>, vector<16x48xf32>
    %cst_8 = arith.constant dense<0.000000e+00> : vector<16x48xf32>
    %23 = tpu.matmul %21, %22, %cst_8 {dimension_numbers = #tpu.dot_dimension_numbers<[1], [0], [0], [1], [0, 0, 1, 1], [], []>} : vector<16x16xf32>, vector<16x48xf32>, vector<16x48xf32> -> vector<16x48xf32>
    %24 = vector.extract_strided_slice %23 {offsets = [0, 0], sizes = [16, 16], strides = [1, 1]} : vector<16x48xf32> to vector<16x16xf32>
    %25 = vector.extract_strided_slice %23 {offsets = [0, 16], sizes = [16, 16], strides = [1, 1]} : vector<16x48xf32> to vector<16x16xf32>
    %26 = vector.extract_strided_slice %23 {offsets = [0, 32], sizes = [16, 16], strides = [1, 1]} : vector<16x48xf32> to vector<16x16xf32>
    %c136 = arith.constant 136 : index
    %c0_9 = arith.constant 0 : index
    %27 = vector.load %arg2[%c136, %c0_9] : memref<200x128xf32, #tpu.memory_space<vmem>>, vector<16x2xf32>
    %28 = vector.extract_strided_slice %27 {offsets = [0, 0], sizes = [16, 1], strides = [1, 1]} : vector<16x2xf32> to vector<16x1xf32>
    %c1_i32_10 = arith.constant 1 : i32
    %29 = tpu.dynamic_rotate %24 by %c1_i32_10 dim 0 : vector<16x16xf32>, i32 -> vector<16x16xf32>
    %30 = vector.broadcast %28 : vector<16x1xf32> to vector<16x16xf32>
    %31 = arith.mulf %30, %29 : vector<16x16xf32>
    %32 = vector.extract_strided_slice %27 {offsets = [0, 1], sizes = [16, 1], strides = [1, 1]} : vector<16x2xf32> to vector<16x1xf32>
    %c15_i32 = arith.constant 15 : i32
    %33 = tpu.dynamic_rotate %26 by %c15_i32 dim 0 : vector<16x16xf32>, i32 -> vector<16x16xf32>
    %34 = vector.broadcast %32 : vector<16x1xf32> to vector<16x16xf32>
    %35 = arith.mulf %34, %33 : vector<16x16xf32>
    %36 = arith.addf %25, %31 : vector<16x16xf32>
    %37 = arith.addf %36, %35 : vector<16x16xf32>
    %c152 = arith.constant 152 : index
    %c0_11 = arith.constant 0 : index
    %38 = vector.load %arg2[%c152, %c0_11] : memref<200x128xf32, #tpu.memory_space<vmem>>, vector<8x16xf32>
    %c160 = arith.constant 160 : index
    %c0_12 = arith.constant 0 : index
    %39 = vector.load %arg2[%c160, %c0_12] : memref<200x128xf32, #tpu.memory_space<vmem>>, vector<1x16xf32>
    %cst_13 = arith.constant dense<0.000000e+00> : vector<8x16xf32>
    %40 = tpu.matmul %38, %37, %cst_13 {dimension_numbers = #tpu.dot_dimension_numbers<[1], [0], [0], [1], [0, 0, 1, 1], [], []>} : vector<8x16xf32>, vector<16x16xf32>, vector<8x16xf32> -> vector<8x16xf32>
    %41 = vector.broadcast %39 : vector<1x16xf32> to vector<8x16xf32>
    %42 = arith.addf %40, %41 : vector<8x16xf32>
    %c168 = arith.constant 168 : index
    %c0_14 = arith.constant 0 : index
    %43 = vector.load %arg2[%c168, %c0_14] : memref<200x128xf32, #tpu.memory_space<vmem>>, vector<16x32xf32>
    %c184 = arith.constant 184 : index
    %c0_15 = arith.constant 0 : index
    %44 = vector.load %arg2[%c184, %c0_15] : memref<200x128xf32, #tpu.memory_space<vmem>>, vector<1x32xf32>
    %c192 = arith.constant 192 : index
    %c0_16 = arith.constant 0 : index
    %45 = vector.load %arg2[%c192, %c0_16] : memref<200x128xf32, #tpu.memory_space<vmem>>, vector<2x8xf32>
    %cst_17 = arith.constant dense<0.000000e+00> : vector<8x32xf32>
    %46 = tpu.matmul %42, %43, %cst_17 {dimension_numbers = #tpu.dot_dimension_numbers<[1], [0], [0], [1], [0, 0, 1, 1], [], []>} : vector<8x16xf32>, vector<16x32xf32>, vector<8x32xf32> -> vector<8x32xf32>
    %47 = vector.broadcast %44 : vector<1x32xf32> to vector<8x32xf32>
    %48 = arith.addf %46, %47 : vector<8x32xf32>
    %49 = math.tanh %48 : vector<8x32xf32>
    %cst_18 = arith.constant dense<0.000000e+00> : vector<2x32xf32>
    %50 = tpu.matmul %45, %49, %cst_18 {dimension_numbers = #tpu.dot_dimension_numbers<[1], [0], [0], [1], [0, 0, 1, 1], [], []>} : vector<2x8xf32>, vector<8x32xf32>, vector<2x32xf32> -> vector<2x32xf32>
    %c0_19 = arith.constant 0 : index
    %c0_20 = arith.constant 0 : index
    %51 = vector.load %arg3[%c0_19, %c0_20] : memref<2x32xf32, #tpu.memory_space<vmem>>, vector<2x32xf32>
    tpu.vector_store %arg3[%c0_19, %c0_20], %50 {strides = array<i32>} : memref<2x32xf32, #tpu.memory_space<vmem>>, vector<2x32xf32>,
    return
  }
  func.func @transform_0(%arg0: i32) -> (i32, i32) {
    %c0_i32 = arith.constant 0 : i32
    %c0_i32_0 = arith.constant 0 : i32
    %c0_i32_1 = arith.constant 0 : i32
    return %c0_i32, %c0_i32_0 : i32, i32
  }
  func.func @transform_1(%arg0: i32) -> (i32, i32) {
    %c0_i32 = arith.constant 0 : i32
    %c0_i32_0 = arith.constant 0 : i32
    %c0_i32_1 = arith.constant 0 : i32
    return %c0_i32, %c0_i32_0 : i32, i32
  }
  func.func @transform_2(%arg0: i32) -> (i32, i32) {
    %c0_i32 = arith.constant 0 : i32
    %c0_i32_0 = arith.constant 0 : i32
    %c0_i32_1 = arith.constant 0 : i32
    return %c0_i32, %c0_i32_0 : i32, i32
  }
}

</mosaic_0001>

<bundles_post_ra>
// kernel: forward.1
= control target key start
LH: loop header
LB: loop body
LE: loop exit
PB: predicated region body
PF: predicated region fallthrough
CT: control target
= control target key end

     0   :  { %vm24_vm0 = vcmask 523264   ;;  %v950_v5 = vmov 1   ;;  %v951_v6 = vmov 0   ;;  %s1154_s0 = inlined_call_operand.vmem [shape: f32[32,64], index: 0, kind: input, shape index: {}]   ;;  %s1155_s1 = inlined_call_operand.vmem [shape: f32[200,128], index: 1, kind: input, shape index: {}]   ;;  %s1156_s2 = inlined_call_operand.hbm [shape: f32[2,32], index: 2, kind: output, shape index: {}]  }
   0x1   :  { %v16_v0 = vld [vmem:[%s1155_s1] sm:$0xff]  ;;  %v17_v1 = vld [vmem:[%s1155_s1 + $0x8] sm:$0xff]  ;;  %v18_v2 = vld [vmem:[%s1155_s1 + $0x10] sm:$0xff]  ;;  %901 = vset.pattern.permute.xlu1 %v950_v5  ;;  %900 = vset.pattern.permute.xlu0 %v951_v6 }
   0x2   :  { %v857_v3 = vpack.c.bf16 %v17_v1, %v16_v0  ;;  %v19_v4 = vld [vmem:[%s1155_s1 + $0x18] sm:$0xff]  ;;  %v20_v8 = vld [vmem:[%s1155_s1 + $0x20] sm:$0xff]  ;;  %v21_v9 = vld [vmem:[%s1155_s1 + $0x28] sm:$0xff] }
   0x3   :  { %v861_v7 = vpack.c.bf16 %v19_v4, %v18_v2  ;;  %v12_v10 = vld [vmem:[%s1154_s0] sm:$0xff]  ;;  %v865_v12 = vpack.c.bf16 %v21_v9, %v20_v8 }
   0x4   :  { %858 = vmatprep.subr.bf16.mxu0 %v857_v3  ;;  %814 = vmatprep.mubr.msk.f32.mxu0 %vm24_vm0, %v12_v10  ;;  %v122_v11 = vld [vmem:[%s1155_s1 + $0x40] sm:$0xff] }
   0x5   :  { %860 = vmatpush3.bf16.msra.mxu0 %v857_v3  ;;  %187 = vperm.xlu1 %901, %v122_v11  }
   0x6   :  { %862 = vmatprep.subr.bf16.mxu0 %v861_v7 }
   0x7   :  { %7 = vsyncpa [#allocation3], 0  ;;  %v22_v13 = vld [vmem:[%s1155_s1 + $0x30] sm:$0xff]  ;;  %v23_v14 = vld [vmem:[%s1155_s1 + $0x38] sm:$0xff]  ;;  %139 = vperm.xlu0 %900, %v122_v11   ;;  %v130_v22 = vlaneseq  ;;  %s952_s13 = smov 96   ;;  %s954_s14 = smov 112  }
   0x8   :  { %v123_v15 = vld [vmem:[%s1155_s1 + $0x48] sm:$0xff]  ;;  %v869_v16 = vpack.c.bf16 %v23_v14, %v22_v13  ;;  %v125_v17 = vld [vmem:[%s1155_s1 + $0x58] sm:$0xff]  ;;  %v124_v18 = vld [vmem:[%s1155_s1 + $0x50] sm:$0xff]  ;;  %vm269_vm3 = vcmask 261120   ;;  %vm353_vm4 = vcmask 130048   ;;  %vm956_vm5 = vmmov 0  }
   0x9   :  { %864 = vmatpush3.bf16.msra.mxu0 %v861_v7  ;;  %191 = vperm.xlu1 %901, %v123_v15   ;;  %v13_v19 = vld [vmem:[%s1154_s0 + $0x8] sm:$0xff]  ;;  %v14_v20 = vld [vmem:[%s1154_s0 + $0x10] sm:$0xff]  ;;  %v15_v21 = vld [vmem:[%s1154_s0 + $0x18] sm:$0xff]  ;;  %v1032_v24 = vshrl.u32 %v130_v22, 7  ;;  %s953_s0 = smov 16   ;;  %vm664_vm6 = vcmask 64512  }
   0xa   :  { %866 = vmatprep.subr.bf16.mxu0 %v865_v12  ;;  %vm738_vm7 = vcmask 254976  }
   0xb   :  { %144 = vperm.xlu0 %900, %v123_v15   ;;  %vm132_vm1 = vcmp.lt.s32.totalorder %v1032_v24, 1  ;;  %vm181_vm2 = vcmp.lt.s32.totalorder %v1032_v24, 7 }
   0xd   :  { %868 = vmatpush3.bf16.msra.mxu0 %v865_v12  ;;  %902 = vset.pattern.permute.xlu1 %v951_v6  ;;  %v246_v12 = vld [vmem:[%s1155_s1 + $0x60] sm:$0xff] }
   0xe   :  { %870 = vmatprep.subr.bf16.mxu0 %v869_v16  ;;  %154 = vperm.xlu1 %902, %v125_v17  }
   0xf   :  { %149 = vperm.xlu0 %900, %v124_v18   ;;  %828 = vmatprep.mubr.msk.f32.mxu1 %vm269_vm3, %v246_v12  ;;  %v583_v12 = vld [vmem:[%s1155_s1 + $0xb0] sm:$0xff] }
  0x11   :  { %872 = vmatpush3.bf16.msra.mxu0 %v869_v16 }
  0x12   :  { %903 = vset.pattern.permute.xlu1 %v950_v5 }
  0x13   :  { %904 = vset.pattern.permute.xlu0 %v950_v5  ;;  %195 = vperm.xlu1 %903, %v124_v18  }
  0x14   :  { %815 = vmatmul.mubr.msk.f32.vlgmr.msra.gmra.mrb[0].mxu0 %vm24_vm0, %v13_v19 }
  0x15   :  { %817 = vmatprep.mubr.msk.f32.mxu0 %vm24_vm0, %v14_v20 }
  0x17   :  { %915 = vset.pattern.permute.xlu1 %v951_v6 }
  0x18   :  { %818 = vmatmul.mubr.msk.f32.gmra.mrb[2].mxu0 %vm24_vm0, %v15_v21 }
  0x84   :  { %v188_v26 = vpop.permute.xlu1 %187 }
  0x86   :  { %v140_v23 = vpop.permute.xlu0 %139 }
  0x88   :  { %v192_v36 = vpop.permute.xlu1 %191 }
  0x8a   :  { %v145_v30 = vpop.permute.xlu0 %144 }
  0x8d   :  { %v155_v44 = vpop.permute.xlu1 %154 }
  0x8e   :  { %v150_v41 = vpop.permute.xlu0 %149 }
  0x92   :  { %v196_v46 = vpop.permute.xlu1 %195 }
  0xe7   :  { %v1034_v25 = vpop.f32.mrb[0].mxu0 }
  0xe8   :  { %v127_v27 = vrot.slane %v1034_v25, 7  ;;  %167 = vrot.lane.b32.xlu1 %v1034_v25, %s952_s13  ;;  %v103_v28 = vpop.f32.mrb[1].mxu0 }
  0xe9   :  { %v126_v29 = vrot.slane %v103_v28, 7  ;;  %165 = vrot.lane.b32.xlu0 %v103_v28, %s952_s13 }
  0xeb   :  { %v135_v31 = vsel %vm132_vm1, %v126_v29, %v127_v27  ;;  %v1043_v32 = vpop.f32.mrb[2].mxu0 }
  0xec   :  { %v129_v33 = vrot.slane %v1043_v32, 7  ;;  %171 = vrot.lane.b32.xlu1 %v1043_v32, %s952_s13  ;;  %v113_v34 = vpop.f32.mrb[3].mxu0  ;;  %v158_v42 = vmul.f32 %v145_v30, %v135_v31  ;;  %v351_v30 = vld [vmem:[%s1155_s1 + $0x78] sm:$0xff]  ;;  %v352_v31 = vld [vmem:[%s1155_s1 + $0x80] sm:$0xff] }
  0xed   :  { %v128_v35 = vrot.slane %v113_v34, 7  ;;  %169 = vrot.lane.b32.xlu0 %v113_v34, %s952_s13 }
  0xee   :  { %v136_v37 = vsel %vm132_vm1, %v129_v33, %v126_v29  ;;  %v247_v29 = vld [vmem:[%s1155_s1 + $0x68] sm:$0xff] }
  0xef   :  { %v133_v38 = vsel %vm132_vm1, %v128_v35, %v129_v33  ;;  %v134_v39 = vsel %vm132_vm1, %v127_v27, %v128_v35  ;;  %v157_v40 = vmul.f32 %v140_v23, %v136_v37  ;;  %v435_v33 = vld [vmem:[%s1155_s1 + $0x88] sm:$0xff]  ;;  %v758_v35 = vld [vmem:[%s1155_s1 + $0x70] ss:$0 sm:$0xff] }
  0xf0   :  { %v159_v43 = vmul.f32 %v150_v41, %v134_v39  ;;  %v160_v45 = vmul.f32 %v155_v44, %v133_v38 }
  0xf1   :  { %210 = vrot.lane.b32.xlu1 %v157_v40, %s953_s0  ;;  %199 = vperm.xlu0 %904, %v125_v17  }
  0xf5   :  { %212 = vrot.lane.b32.xlu0 %v158_v42, %s953_s0  ;;  %214 = vrot.lane.b32.xlu1 %v159_v43, %s953_s0 }
  0xf6   :  { %916 = vset.pattern.permute.xlu0 %v951_v6 }
  0xf9   :  { %216 = vrot.lane.b32.xlu0 %v160_v45, %s953_s0 }
 0x15a   :  { %v168_v47 = vpop.permute.xlu1 %167 }
 0x15b   :  { %v178_v48 = vrot.slane %v168_v47, 1  ;;  %v166_v49 = vpop.permute.xlu0 %165 }
 0x15c   :  { %v177_v50 = vrot.slane %v166_v49, 1 }
 0x15e   :  { %v172_v51 = vpop.permute.xlu1 %171  ;;  %v184_v52 = vsel %vm181_vm2, %v177_v50, %v178_v48 }
 0x15f   :  { %v180_v53 = vrot.slane %v172_v51, 1  ;;  %v170_v54 = vpop.permute.xlu0 %169  ;;  %v202_v55 = vmul.f32 %v188_v26, %v184_v52 }
 0x160   :  { %v179_v56 = vrot.slane %v170_v54, 1 }
 0x161   :  { %230 = vrot.lane.b32.xlu1 %v202_v55, %s953_s0  ;;  %v185_v61 = vsel %vm181_vm2, %v180_v53, %v177_v50 }
 0x162   :  { %v182_v57 = vsel %vm181_vm2, %v179_v56, %v180_v53  ;;  %v183_v58 = vsel %vm181_vm2, %v178_v48, %v179_v56 }
 0x163   :  { %v204_v59 = vmul.f32 %v196_v46, %v182_v57  ;;  %v203_v60 = vmul.f32 %v192_v36, %v183_v58  ;;  %v211_v0 = vpop.permute.xlu1 %210 }
 0x164   :  { %v222_v6 = vadd.f32 %v211_v0, %v103_v28 }
 0x165   :  { %234 = vrot.lane.b32.xlu1 %v204_v59, %s953_s0  ;;  %232 = vrot.lane.b32.xlu0 %v203_v60, %s953_s0  ;;  %v955_v59 = vmov 0.0|0.0  }
 0x167   :  { %v215_v2 = vpop.permute.xlu1 %214 }
 0x168   :  { %v224_v14 = vadd.f32 %v215_v2, %v113_v34  ;;  %v436_v34 = vld [vmem:[%s1155_s1 + $0x90] sm:$0xff] }
 0x170   :  { %v200_v62 = vpop.permute.xlu0 %199 }
 0x171   :  { %v205_v63 = vmul.f32 %v200_v62, %v185_v61  ;;  %v957_v62 = vmov 0.0  }
 0x172   :  { %852 = vmatprep.subr.mxu0 %v957_v62  ;;  %854 = vmatprep.mubr.msk.f32.mxu0 %vm956_vm5, %v957_v62 }
 0x173   :  { %236 = vrot.lane.b32.xlu0 %v205_v63, %s953_s0 }
 0x174   :  { %v213_v1 = vpop.permute.xlu0 %212 }
 0x175   :  { %v223_v7 = vadd.f32 %v1034_v25, %v213_v1 }
 0x178   :  { %v217_v3 = vpop.permute.xlu0 %216 }
 0x179   :  { %v225_v15 = vadd.f32 %v1043_v32, %v217_v3  ;;  %v881_v32 = vpack.c.bf16 %v352_v31, %v351_v30 }
 0x1d3   :  { %v231_v4 = vpop.permute.xlu1 %230 }
 0x1d4   :  { %v242_v9 = vadd.f32 %v231_v4, %v222_v6 }
 0x1d7   :  { %v233_v8 = vpop.permute.xlu0 %232  ;;  %v235_v13 = vpop.permute.xlu1 %234 }
 0x1d8   :  { %v243_v10 = vadd.f32 %v233_v8, %v223_v7  ;;  %v244_v17 = vadd.f32 %v235_v13, %v224_v14  ;;  %v763_v14 = vld [vmem:[%s1155_s1 + $0xa0] ss:$0 sm:$0xff] }
 0x1da   :  { %v905_v11 = vpack.i.bf16 %v243_v10, %v242_v9  ;;  %v495_v10 = vld [vmem:[%s1155_s1 + $0x98] sm:$0xff] }
 0x1dc   :  { %906 = vrot.lane.b32.xlu1 %v905_v11, %s954_s14  ;;  %v582_v11 = vld [vmem:[%s1155_s1 + $0xa8] sm:$0xff] }
 0x1dd   :  { %v889_v13 = vpack.c.bf16 %v583_v12, %v582_v11 }
 0x1e0   :  { %443 = vperm.xlu1 %915, %v435_v33  }
 0x1e4   :  { %917 = vset.pattern.permute.xlu1 %v950_v5 }
 0x1e5   :  { %v237_v16 = vpop.permute.xlu0 %236  ;;  %466 = vperm.xlu1 %917, %v435_v33  }
 0x1e6   :  { %v245_v18 = vadd.f32 %v237_v16, %v225_v15 }
 0x1e8   :  { %v910_v19 = vpack.i.bf16 %v245_v18, %v244_v17  ;;  %v765_v18 = vld [vmem:[%s1155_s1 + $0xb8] ss:$0 sm:$0xff] }
 0x1e9   :  { %470 = vperm.xlu1 %917, %v436_v34  }
 0x1ea   :  { %911 = vrot.lane.b32.xlu0 %v910_v19, %s954_s14 }
 0x1ee   :  { %448 = vperm.xlu0 %916, %v436_v34  }
 0x1f2   :  { %923 = vset.pattern.permute.xlu0 %v950_v5 }
 0x24e   :  { %v907_v20 = vpop.permute.xlu1 %906 }
 0x24f   :  { %v909_v21 = vunpack.i.h.bf16 %v907_v20  ;;  %v908_v22 = vunpack.i.l.bf16 %v907_v20 }
 0x251   :  { %v873_v23 = vpack.c.bf16 %v909_v21, %v908_v22  ;;  %v585_v22 = vld [vmem:[%s1155_s1 + $0xc0] sm:$0x3] }
 0x253   :  { %874 = vmatprep.subr.bf16.mxu1 %v873_v23 }
 0x254   :  { %876 = vmatpush3.bf16.msra.mxu1 %v873_v23 }
 0x25c   :  { %v912_v25 = vpop.permute.xlu0 %911 }
 0x25d   :  { %v914_v26 = vunpack.i.h.bf16 %v912_v25  ;;  %v913_v27 = vunpack.i.l.bf16 %v912_v25 }
 0x25f   :  { %v877_v28 = vpack.c.bf16 %v914_v26, %v913_v27  ;;  %v444_v43 = vpop.permute.xlu1 %443 }
 0x261   :  { %878 = vmatprep.subr.bf16.mxu1 %v877_v28 }
 0x262   :  { %880 = vmatpush3.bf16.msra.mxu1 %v877_v28 }
 0x263   :  { %882 = vmatprep.subr.bf16.mxu1 %v881_v32 }
 0x264   :  { %v467_v49 = vpop.permute.xlu1 %466 }
 0x265   :  { %829 = vmatmul.mubr.msk.f32.vlgmr.msra.gmra.mrb[0].mxu1 %vm269_vm3, %v247_v29 }
 0x266   :  { %884 = vmatpush3.bf16.msra.mxu1 %v881_v32 }
 0x267   :  { %885 = vmatprep.subr.bf16.mxu1 %v955_v59 }
 0x268   :  { %v471_v50 = vpop.permute.xlu1 %470 }
 0x26d   :  { %v449_v44 = vpop.permute.xlu0 %448 }
 0x338   :  { %v830_v36 = vpop.f32.mrb[0].mxu1 }
 0x339   :  { %v342_v37 = vpop.f32.mrb[1].mxu1  ;;  %v348_v39 = vadd.f32 %v830_v36, %v758_v35 }
 0x33a   :  { %v343_v38 = vadd.f32 %v758_v35, %v342_v37 }
 0x33c   :  { %835 = vmatprep.mubr.msk.f32.mxu1 %vm353_vm4, %v343_v38 }
 0x33d   :  { %836 = vmatmul.mubr.msk.f32.vlgmr.msra.gmra.mrb[2].mxu1 %vm353_vm4, %v348_v39 }
 0x33e   :  { %842 = vmatprep.mubr.msk.f32.mxu1 %vm956_vm5, %v957_v62 }
 0x410   :  { %v837_v40 = vpop.f32.mrb[2].mxu1 }
 0x411   :  { %v438_v41 = vrot.slane %v837_v40, 7  ;;  %457 = vrot.lane.b32.xlu1 %v837_v40, %s952_s13  ;;  %v426_v5 = vpop.f32.mrb[3].mxu1 }
 0x412   :  { %v437_v42 = vrot.slane %v426_v5, 7  ;;  %455 = vrot.lane.b32.xlu0 %v426_v5, %s952_s13  ;;  %s958_s13 = smov [#allocation2]  }
 0x414   :  { %v440_v45 = vsel %vm132_vm1, %v438_v41, %v437_v42  ;;  %v439_v46 = vsel %vm132_vm1, %v437_v42, %v438_v41 }
 0x415   :  { %v451_v47 = vmul.f32 %v444_v43, %v440_v45  ;;  %v452_v48 = vmul.f32 %v449_v44, %v439_v46 }
 0x417   :  { %477 = vrot.lane.b32.xlu0 %v451_v47, %s953_s0  ;;  %479 = vrot.lane.b32.xlu1 %v452_v48, %s953_s0 }
 0x483   :  { %v458_v51 = vpop.permute.xlu1 %457 }
 0x484   :  { %v462_v52 = vrot.slane %v458_v51, 1  ;;  %v456_v53 = vpop.permute.xlu0 %455 }
 0x485   :  { %v461_v54 = vrot.slane %v456_v53, 1 }
 0x487   :  { %v463_v55 = vsel %vm181_vm2, %v461_v54, %v462_v52  ;;  %v464_v56 = vsel %vm181_vm2, %v462_v52, %v461_v54 }
 0x488   :  { %v473_v57 = vmul.f32 %v467_v49, %v463_v55  ;;  %v474_v58 = vmul.f32 %v471_v50, %v464_v56 }
 0x489   :  { %v478_v60 = vpop.permute.xlu0 %477  ;;  %v480_v61 = vpop.permute.xlu1 %479 }
 0x48a   :  { %487 = vrot.lane.b32.xlu0 %v473_v57, %s953_s0  ;;  %489 = vrot.lane.b32.xlu1 %v474_v58, %s953_s0  ;;  %v483_v63 = vadd.f32 %v478_v60, %v426_v5  ;;  %v484_v24 = vadd.f32 %v837_v40, %v480_v61  ;;  %s746_s0 = sshll.u32 %s958_s13, 4  ;;  %s747_s0 = int_to_ptr.vmem [resolvable:$true] %s746_s0 }
 0x48b   :  { %p931_p1 = scmp.lt.s32.totalorder %s747_s0, %s747_s0 }
 0x4fc   :  { %v488_v0 = vpop.permute.xlu0 %487  ;;  %v490_v1 = vpop.permute.xlu1 %489 }
 0x4fd   :  { %v493_v2 = vadd.f32 %v488_v0, %v483_v63  ;;  %v494_v3 = vadd.f32 %v490_v1, %v484_v24 }
 0x4ff   :  { %v918_v4 = vpack.i.bf16 %v494_v3, %v493_v2 }
 0x501   :  { %919 = vrot.lane.b32.xlu0 %v918_v4, %s954_s14  ;;  %s926_s14 = scalar_lea.vmem %s747_s0, 32 }
 0x502   :  { %p927_p0 = scmp.ne.s32.totalorder %s747_s0, %s926_s14  ;;  %p932_p2 = scmp.lt.s32.totalorder %s926_s14, %s926_s14 }
 0x504   :  { %p933_p3 = por %p932_p2, %p931_p1 }
 0x506   :  { %p934_p4 = pnand %p933_p3, %p927_p0 }
 0x573   :  { %v920_v6 = vpop.permute.xlu0 %919 }
 0x574   :  { %v922_v7 = vunpack.i.h.bf16 %v920_v6  ;;  %v921_v8 = vunpack.i.l.bf16 %v920_v6 }
 0x576   :  { %v886_v9 = vpack.c.bf16 %v922_v7, %v921_v8 }
 0x578   :  { %887 = vmatpush3.bf16.msra.mxu1 %v886_v9 }
 0x579   :  { %888 = vmatprep.subr.bf16.mxu1 %v955_v59 }
 0x57b   :  { %843 = vmatmul.mubr.msk.f32.vlgmr.msra.gmra.mrb[4].mxu1 %vm353_vm4, %v495_v10 }
 0x57c   :  { %849 = vmatprep.mubr.msk.f32.mxu1 %vm956_vm5, %v957_v62  ;;  %890 = vmatpush3.bf16.msra.mxu1 %v889_v13 }
 0x64e   :  { %v578_v15 = vpop.f32.mrb[4].mxu1 }
 0x64f   :  { %v579_v16 = vadd.f32 %v763_v14, %v578_v15  ;;  %v844_v17 = vpop.f32.mrb[5].mxu1 }
 0x651   :  { %850 = vmatmul.mubr.msk.f32.vlgmr.msra.gmra.mrb[6].mxu1 %vm353_vm4, %v579_v16 }
 0x724   :  { %v659_v19 = vpop.f32.mrb[6].mxu1 }
 0x725   :  { %v660_v20 = vadd.f32 %v765_v18, %v659_v19  ;;  %v851_v21 = vpop.f32.mrb[7].mxu1 }
 0x727   :  { %924 = vtanh.f32 %v660_v20 }
 0x731   :  { %v925_v23 = vpop.eup %924 }
 0x732   :  { %853 = vmatpush3.msra.mxu0 %v925_v23 }
 0x733   :  { %855 = vmatmul.mubr.msk.f32.vlgmr.msra.gmra.mrb[4].mxu0 %vm664_vm6, %v585_v22 }
 0x806   :  { %v734_v25 = vpop.f32.mrb[4].mxu0 }
 0x807   :  { %739 = vst.msk [vmem:[#allocation2] sm:$0x3] %vm738_vm7, %v734_v25  ;;  %v856_v26 = vpop.f32.mrb[5].mxu0 }
 0x808   :  { %937 = shalt.err (!%p934_p4)
}
 0x809   :  { %s938_s16 = scalar_lea.hbm %s1156_s2, 32 }
 0x80a   :  { %p939_p5 = scmp.ne.s32.totalorder %s1156_s2, %s938_s16  ;;  %p942_p6 = scmp.lt.u32.totalorder %s938_s16, %s1156_s2 }
 0x80c   :  { %p944_p7 = pnand %p942_p6, %p939_p5 }
 0x80e   :  { %947 = shalt.err (!%p944_p7)
}
 0x80f   :  { %749 = dma.vmem_to_hbm [thread:$0]  %s747_s0, 32, %s1156_s2, [#allocation3]  }
 0x810   :  { %948 = dma.done.wait [#allocation3], 32  }
 0x811   :  { %949 = vsyncadd [#allocation3], 4294967264 }
 0x812   :  { %753 = vsyncpa [#allocation3], 1 }

</bundles_post_ra>
